<compile_context>
chip_gen: v7x
topology: tpu7x:2x2x1
jax: 0.10.0
libtpu: 0.0.40
codegen_flags: <defaults>
</compile_context>

<pallas_src>
import functools

import jax
import jax.numpy as jnp
from jax.experimental import pallas as pl
from jax.experimental.pallas import tpu as pltpu

HIDDEN = 64        # logical hidden width (matches nn.Linear(.., 64))
HIDDEN_PAD = 128   # lane-dense padded hidden width
LANE = 128


def _cdiv(a, b):
    return (a + b - 1) // b


def _round_up(x, m):
    return ((x + m - 1) // m) * m


def _pad2(a, shape):
    return jnp.pad(a, [(0, t - s) for s, t in zip(a.shape, shape)])


def _choose_tile(B, tile_cap):
    """Batch tile: multiple of 16 (bf16 sublanes), capped, and >=2 grid steps
    when B allows it so both v7x TensorCores get work."""
    n_tiles = max(2, _cdiv(B, tile_cap))
    tile = _round_up(max(1, _cdiv(B, n_tiles)), 16)
    tile = max(16, min(tile, _round_up(tile_cap, 16)))
    b_pad = tile * _cdiv(B, tile)
    return tile, b_pad


def qnet_kernel(x_ref, w1_ref, b1_ref, w2_ref, b2_ref,
                w3_ref, b3_ref, w4_ref, b4_ref, o_ref):
    # x arrives f32 (no wrapper cast pass); cast to bf16 in-kernel for the MXU.
    # All matmuls accumulate in f32; biases are f32; ReLU epilogue in f32.
    a = o_ref.shape[-1]
    x = x_ref[...].astype(jnp.bfloat16)                               # (TILE_B, S)

    h = jnp.dot(x, w1_ref[...], preferred_element_type=jnp.float32) + b1_ref[...]
    h = jnp.maximum(h, 0.0).astype(jnp.bfloat16)

    h = jnp.dot(h, w2_ref[...], preferred_element_type=jnp.float32) + b2_ref[...]
    h = jnp.maximum(h, 0.0).astype(jnp.bfloat16)

    h = jnp.dot(h, w3_ref[...], preferred_element_type=jnp.float32) + b3_ref[...]
    h = jnp.maximum(h, 0.0).astype(jnp.bfloat16)

    out = jnp.dot(h, w4_ref[...], preferred_element_type=jnp.float32) + b4_ref[...]
    # Narrow store: only the A real action columns hit HBM (32x fewer bytes
    # than a 128-lane f32 slab).
    o_ref[...] = out[:, :a].astype(o_ref.dtype)


def prepare_params(params):
    """Pad to 128-wide layers (exact through ReLU) and cast to bf16 ONCE.
    Biases stay f32 (added post-accumulate). Reuse the result across calls."""
    S = params["w1"].shape[0]
    A = params["w4"].shape[1]
    AP = _round_up(max(A, LANE), LANE)
    prep = {
        "w1": _pad2(params["w1"], (S, HIDDEN_PAD)).astype(jnp.bfloat16),
        "b1": _pad2(params["b1"], (1, HIDDEN_PAD)).astype(jnp.float32),
        "w2": _pad2(params["w2"], (HIDDEN_PAD, HIDDEN_PAD)).astype(jnp.bfloat16),
        "b2": _pad2(params["b2"], (1, HIDDEN_PAD)).astype(jnp.float32),
        "w3": _pad2(params["w3"], (HIDDEN_PAD, HIDDEN_PAD)).astype(jnp.bfloat16),
        "b3": _pad2(params["b3"], (1, HIDDEN_PAD)).astype(jnp.float32),
        "w4": _pad2(params["w4"], (HIDDEN_PAD, AP)).astype(jnp.bfloat16),
        "b4": _pad2(params["b4"], (1, AP)).astype(jnp.float32),
    }
    return prep, A


@functools.partial(jax.jit, static_argnames=("action_size", "tile_cap"))
def qnetwork_forward(x, prep, action_size, tile_cap=2048):
    """x: (B, state_size) float32; prep: output of prepare_params (padded bf16
    weights / f32 biases). Returns (B, action_size) float32 Q-values."""
    B, S = x.shape
    A = action_size
    AP = prep["w4"].shape[1]

    tile_b, b_pad = _choose_tile(B, tile_cap)
    grid = (b_pad // tile_b,)

    # Only pad the batch dim when needed; x stays f32 (cast happens in-kernel).
    x_in = x if b_pad == B else jnp.pad(x, ((0, b_pad - B), (0, 0)))

    def resident(shape):
        # Weights/biases: same block every grid step -> stay VMEM-resident.
        # TODO(synk): could mark pipeline_mode=pl.Buffered(1) to drop the second
        # buffer (~100 KB VMEM); left default for lowering robustness.
        return pl.BlockSpec(shape, lambda i: (0, 0))

    flops = 2 * b_pad * (S * HIDDEN_PAD + 2 * HIDDEN_PAD * HIDDEN_PAD + HIDDEN_PAD * AP)
    weight_bytes = sum(prep[k].size * prep[k].dtype.itemsize for k in prep)
    bytes_accessed = x_in.size * 4 + b_pad * A * 4 + weight_bytes

    out = pl.pallas_call(
        qnet_kernel,
        out_shape=jax.ShapeDtypeStruct((b_pad, A), jnp.float32),
        grid_spec=pltpu.PrefetchScalarGridSpec(
            num_scalar_prefetch=0,
            grid=grid,
            in_specs=[
                pl.BlockSpec((tile_b, S), lambda i: (i, 0)),           # x: pipelined
                resident((S, HIDDEN_PAD)), resident((1, HIDDEN_PAD)),  # W1, b1
                resident((HIDDEN_PAD, HIDDEN_PAD)), resident((1, HIDDEN_PAD)),  # W2, b2
                resident((HIDDEN_PAD, HIDDEN_PAD)), resident((1, HIDDEN_PAD)),  # W3, b3
                resident((HIDDEN_PAD, AP)), resident((1, AP)),         # W4, b4
            ],
            # Narrow output block: A equals the full last dim of the out array,
            # so the (tile_b, A) block satisfies the tiling rules.
            out_specs=pl.BlockSpec((tile_b, A), lambda i: (i, 0)),
        ),
        compiler_params=pltpu.CompilerParams(
            dimension_semantics=("parallel",),       # shard batch tiles across TCs (v7x)
            vmem_limit_bytes=32 * 1024 * 1024,       # safe even on v7x's 64 MiB VMEM
        ),
        cost_estimate=pl.CostEstimate(
            flops=int(flops), transcendentals=0, bytes_accessed=int(bytes_accessed)),
    )(x_in, prep["w1"], prep["b1"], prep["w2"], prep["b2"],
      prep["w3"], prep["b3"], prep["w4"], prep["b4"])

    return out if b_pad == B else out[:B]


def init_params(key, state_size, action_size, hidden=HIDDEN):
    """Deterministic init mimicking PyTorch Linear's U(-1/sqrt(fan_in), 1/sqrt(fan_in))."""
    dims = [(state_size, hidden), (hidden, hidden), (hidden, hidden), (hidden, action_size)]
    params = {}
    for i, (fan_in, fan_out) in enumerate(dims, start=1):
        key, kw, kb = jax.random.split(key, 3)
        bound = 1.0 / jnp.sqrt(jnp.float32(fan_in))
        params[f"w{i}"] = jax.random.uniform(
            kw, (fan_in, fan_out), jnp.float32, minval=-bound, maxval=bound)
        params[f"b{i}"] = jax.random.uniform(
            kb, (1, fan_out), jnp.float32, minval=-bound, maxval=bound)
    return params


def reference_forward(x, params):
    """Pure-JAX reference mirroring the kernel's bf16-compute / f32-accumulate."""
    def layer(h, w, b, relu):
        y = jnp.dot(h.astype(jnp.bfloat16), w.astype(jnp.bfloat16),
                    preferred_element_type=jnp.float32) + b.astype(jnp.float32)
        return jnp.maximum(y, 0.0) if relu else y
    h = layer(x, params["w1"], params["b1"], True)
    h = layer(h, params["w2"], params["b2"], True)
    h = layer(h, params["w3"], params["b3"], True)
    return layer(h, params["w4"], params["b4"], False)


if __name__ == "__main__":
    state_size = 8
    action_size = 4

    key = jax.random.PRNGKey(0)
    key, kx = jax.random.split(key)
    params = init_params(key, state_size, action_size)

    # Pad/cast weights once (hoisted out of the per-call path).
    prep, A = prepare_params(params)
    assert A == action_size

    # Small-batch check (matches the toy module usage).
    x_small = jax.random.normal(kx, (2, state_size), jnp.float32)
    out_small = jax.block_until_ready(qnetwork_forward(x_small, prep, action_size))
    ref_small = reference_forward(x_small, params)
    assert out_small.shape == (2, action_size)
    assert out_small.dtype == jnp.float32
    assert jnp.allclose(out_small, ref_small, atol=2e-2, rtol=2e-2), "small-batch mismatch"

    # Larger batch to exercise the batch grid (>=2 tiles), pipelining and padding.
    key, kx2 = jax.random.split(key)
    x_big = jax.random.normal(kx2, (300, state_size), jnp.float32)
    out_big = jax.block_until_ready(qnetwork_forward(x_big, prep, action_size))
    ref_big = reference_forward(x_big, params)
    assert out_big.shape == (300, action_size)
    assert jnp.allclose(out_big, ref_big, atol=2e-2, rtol=2e-2), "large-batch mismatch"

    print("KERNEL_OK")
</pallas_src>

<mosaic_0001>
module attributes {stable_mosaic.version = 11 : i64} {
  func.func @qnet_kernel(%arg0: i32, %arg1: memref<16x8xf32, #tpu.memory_space<vmem>>, %arg2: memref<8x128xbf16, #tpu.memory_space<vmem>>, %arg3: memref<1x128xf32, #tpu.memory_space<vmem>>, %arg4: memref<128x128xbf16, #tpu.memory_space<vmem>>, %arg5: memref<1x128xf32, #tpu.memory_space<vmem>>, %arg6: memref<128x128xbf16, #tpu.memory_space<vmem>>, %arg7: memref<1x128xf32, #tpu.memory_space<vmem>>, %arg8: memref<128x128xbf16, #tpu.memory_space<vmem>>, %arg9: memref<1x128xf32, #tpu.memory_space<vmem>>, %arg10: memref<16x4xf32, #tpu.memory_space<vmem>>) attributes {dimension_semantics = [#tpu.dimension_semantics<parallel>], iteration_bounds = array<i64: 1>, scalar_prefetch = 0 : i64, scratch_operands = 0 : i64, tpu.core_type = #tpu.core_type<tc>, window_params = [{transform_indices = @transform_0, window_bounds = array<i64: 16, 8>}, {pipeline_mode = #tpu.pipeline_mode<synchronous>, transform_indices = @transform_1, window_bounds = array<i64: 8, 128>}, {pipeline_mode = #tpu.pipeline_mode<synchronous>, transform_indices = @transform_2, window_bounds = array<i64: 1, 128>}, {pipeline_mode = #tpu.pipeline_mode<synchronous>, transform_indices = @transform_3, window_bounds = array<i64: 128, 128>}, {pipeline_mode = #tpu.pipeline_mode<synchronous>, transform_indices = @transform_4, window_bounds = array<i64: 1, 128>}, {pipeline_mode = #tpu.pipeline_mode<synchronous>, transform_indices = @transform_5, window_bounds = array<i64: 128, 128>}, {pipeline_mode = #tpu.pipeline_mode<synchronous>, transform_indices = @transform_6, window_bounds = array<i64: 1, 128>}, {pipeline_mode = #tpu.pipeline_mode<synchronous>, transform_indices = @transform_7, window_bounds = array<i64: 128, 128>}, {pipeline_mode = #tpu.pipeline_mode<synchronous>, transform_indices = @transform_8, window_bounds = array<i64: 1, 128>}, {transform_indices = @transform_9, window_bounds = array<i64: 16, 4>}]} {
    %c0 = arith.constant 0 : index
    %c0_0 = arith.constant 0 : index
    %0 = vector.load %arg1[%c0, %c0_0] : memref<16x8xf32, #tpu.memory_space<vmem>>, vector<16x8xf32>
    %1 = arith.truncf %0 : vector<16x8xf32> to vector<16x8xbf16>
    %c0_1 = arith.constant 0 : index
    %c0_2 = arith.constant 0 : index
    %2 = vector.load %arg2[%c0_1, %c0_2] : memref<8x128xbf16, #tpu.memory_space<vmem>>, vector<8x128xbf16>
    %cst = arith.constant dense<0.000000e+00> : vector<16x128xf32>
    %3 = tpu.matmul %1, %2, %cst {dimension_numbers = #tpu.dot_dimension_numbers<[1], [0], [0], [1], [0, 0, 1, 1], [], []>} : vector<16x8xbf16>, vector<8x128xbf16>, vector<16x128xf32> -> vector<16x128xf32>
    %c0_3 = arith.constant 0 : index
    %c0_4 = arith.constant 0 : index
    %4 = vector.load %arg3[%c0_3, %c0_4] : memref<1x128xf32, #tpu.memory_space<vmem>>, vector<1x128xf32>
    %5 = vector.broadcast %4 : vector<1x128xf32> to vector<16x128xf32>
    %6 = arith.addf %3, %5 : vector<16x128xf32>
    %cst_5 = arith.constant 0.000000e+00 : f32
    %7 = vector.broadcast %cst_5 : f32 to vector<16x128xf32>
    %8 = arith.maximumf %6, %7 : vector<16x128xf32>
    %9 = arith.truncf %8 : vector<16x128xf32> to vector<16x128xbf16>
    %c0_6 = arith.constant 0 : index
    %c0_7 = arith.constant 0 : index
    %10 = vector.load %arg4[%c0_6, %c0_7] : memref<128x128xbf16, #tpu.memory_space<vmem>>, vector<128x128xbf16>
    %cst_8 = arith.constant dense<0.000000e+00> : vector<16x128xf32>
    %11 = tpu.matmul %9, %10, %cst_8 {dimension_numbers = #tpu.dot_dimension_numbers<[1], [0], [0], [1], [0, 0, 1, 1], [], []>} : vector<16x128xbf16>, vector<128x128xbf16>, vector<16x128xf32> -> vector<16x128xf32>
    %c0_9 = arith.constant 0 : index
    %c0_10 = arith.constant 0 : index
    %12 = vector.load %arg5[%c0_9, %c0_10] : memref<1x128xf32, #tpu.memory_space<vmem>>, vector<1x128xf32>
    %13 = vector.broadcast %12 : vector<1x128xf32> to vector<16x128xf32>
    %14 = arith.addf %11, %13 : vector<16x128xf32>
    %cst_11 = arith.constant 0.000000e+00 : f32
    %15 = vector.broadcast %cst_11 : f32 to vector<16x128xf32>
    %16 = arith.maximumf %14, %15 : vector<16x128xf32>
    %17 = arith.truncf %16 : vector<16x128xf32> to vector<16x128xbf16>
    %c0_12 = arith.constant 0 : index
    %c0_13 = arith.constant 0 : index
    %18 = vector.load %arg6[%c0_12, %c0_13] : memref<128x128xbf16, #tpu.memory_space<vmem>>, vector<128x128xbf16>
    %cst_14 = arith.constant dense<0.000000e+00> : vector<16x128xf32>
    %19 = tpu.matmul %17, %18, %cst_14 {dimension_numbers = #tpu.dot_dimension_numbers<[1], [0], [0], [1], [0, 0, 1, 1], [], []>} : vector<16x128xbf16>, vector<128x128xbf16>, vector<16x128xf32> -> vector<16x128xf32>
    %c0_15 = arith.constant 0 : index
    %c0_16 = arith.constant 0 : index
    %20 = vector.load %arg7[%c0_15, %c0_16] : memref<1x128xf32, #tpu.memory_space<vmem>>, vector<1x128xf32>
    %21 = vector.broadcast %20 : vector<1x128xf32> to vector<16x128xf32>
    %22 = arith.addf %19, %21 : vector<16x128xf32>
    %cst_17 = arith.constant 0.000000e+00 : f32
    %23 = vector.broadcast %cst_17 : f32 to vector<16x128xf32>
    %24 = arith.maximumf %22, %23 : vector<16x128xf32>
    %25 = arith.truncf %24 : vector<16x128xf32> to vector<16x128xbf16>
    %c0_18 = arith.constant 0 : index
    %c0_19 = arith.constant 0 : index
    %26 = vector.load %arg8[%c0_18, %c0_19] : memref<128x128xbf16, #tpu.memory_space<vmem>>, vector<128x128xbf16>
    %cst_20 = arith.constant dense<0.000000e+00> : vector<16x128xf32>
    %27 = tpu.matmul %25, %26, %cst_20 {dimension_numbers = #tpu.dot_dimension_numbers<[1], [0], [0], [1], [0, 0, 1, 1], [], []>} : vector<16x128xbf16>, vector<128x128xbf16>, vector<16x128xf32> -> vector<16x128xf32>
    %c0_21 = arith.constant 0 : index
    %c0_22 = arith.constant 0 : index
    %28 = vector.load %arg9[%c0_21, %c0_22] : memref<1x128xf32, #tpu.memory_space<vmem>>, vector<1x128xf32>
    %29 = vector.broadcast %28 : vector<1x128xf32> to vector<16x128xf32>
    %30 = arith.addf %27, %29 : vector<16x128xf32>
    %31 = vector.extract_strided_slice %30 {offsets = [0, 0], sizes = [16, 4], strides = [1, 1]} : vector<16x128xf32> to vector<16x4xf32>
    %c0_23 = arith.constant 0 : index
    %c0_24 = arith.constant 0 : index
    %32 = vector.load %arg10[%c0_23, %c0_24] : memref<16x4xf32, #tpu.memory_space<vmem>>, vector<16x4xf32>
    tpu.vector_store %arg10[%c0_23, %c0_24], %31 {strides = array<i32>} : memref<16x4xf32, #tpu.memory_space<vmem>>, vector<16x4xf32>,
    return
  }
  func.func @transform_0(%arg0: i32) -> (i32, i32) {
    %c0_i32 = arith.constant 0 : i32
    %c0_i32_0 = arith.constant 0 : i32
    return %arg0, %c0_i32 : i32, i32
  }
  func.func @transform_1(%arg0: i32) -> (i32, i32) {
    %c0_i32 = arith.constant 0 : i32
    %c0_i32_0 = arith.constant 0 : i32
    %c0_i32_1 = arith.constant 0 : i32
    return %c0_i32, %c0_i32_0 : i32, i32
  }
  func.func @transform_2(%arg0: i32) -> (i32, i32) {
    %c0_i32 = arith.constant 0 : i32
    %c0_i32_0 = arith.constant 0 : i32
    %c0_i32_1 = arith.constant 0 : i32
    return %c0_i32, %c0_i32_0 : i32, i32
  }
  func.func @transform_3(%arg0: i32) -> (i32, i32) {
    %c0_i32 = arith.constant 0 : i32
    %c0_i32_0 = arith.constant 0 : i32
    %c0_i32_1 = arith.constant 0 : i32
    return %c0_i32, %c0_i32_0 : i32, i32
  }
  func.func @transform_4(%arg0: i32) -> (i32, i32) {
    %c0_i32 = arith.constant 0 : i32
    %c0_i32_0 = arith.constant 0 : i32
    %c0_i32_1 = arith.constant 0 : i32
    return %c0_i32, %c0_i32_0 : i32, i32
  }
  func.func @transform_5(%arg0: i32) -> (i32, i32) {
    %c0_i32 = arith.constant 0 : i32
    %c0_i32_0 = arith.constant 0 : i32
    %c0_i32_1 = arith.constant 0 : i32
    return %c0_i32, %c0_i32_0 : i32, i32
  }
  func.func @transform_6(%arg0: i32) -> (i32, i32) {
    %c0_i32 = arith.constant 0 : i32
    %c0_i32_0 = arith.constant 0 : i32
    %c0_i32_1 = arith.constant 0 : i32
    return %c0_i32, %c0_i32_0 : i32, i32
  }
  func.func @transform_7(%arg0: i32) -> (i32, i32) {
    %c0_i32 = arith.constant 0 : i32
    %c0_i32_0 = arith.constant 0 : i32
    %c0_i32_1 = arith.constant 0 : i32
    return %c0_i32, %c0_i32_0 : i32, i32
  }
  func.func @transform_8(%arg0: i32) -> (i32, i32) {
    %c0_i32 = arith.constant 0 : i32
    %c0_i32_0 = arith.constant 0 : i32
    %c0_i32_1 = arith.constant 0 : i32
    return %c0_i32, %c0_i32_0 : i32, i32
  }
  func.func @transform_9(%arg0: i32) -> (i32, i32) {
    %c0_i32 = arith.constant 0 : i32
    %c0_i32_0 = arith.constant 0 : i32
    return %arg0, %c0_i32 : i32, i32
  }
}

</mosaic_0001>

<bundles_post_ra>
// kernel: qnetwork_forward.1
= control target key start
LH: loop header
LB: loop body
LE: loop exit
PB: predicated region body
PF: predicated region fallthrough
CT: control target
= control target key end

     0   :  { %14 = vsyncpa [#allocation3], 0  ;;  %s882_s0 = inlined_call_operand.vmem [shape: f32[16,8], index: 0, kind: input, shape index: {}]   ;;  %s883_s1 = inlined_call_operand.vmem [shape: bf16[8,128], index: 1, kind: input, shape index: {}]   ;;  %s884_s2 = inlined_call_operand.vmem [shape: f32[1,128], index: 2, kind: input, shape index: {}]   ;;  %s885_s3 = inlined_call_operand.hbm [shape: bf16[128,128], index: 3, kind: input, shape index: {}]   ;;  %s886_s4 = inlined_call_operand.vmem [shape: f32[1,128], index: 4, kind: input, shape index: {}]   ;;  %s887_s5 = inlined_call_operand.hbm [shape: bf16[128,128], index: 5, kind: input, shape index: {}]   ;;  %s888_s6 = inlined_call_operand.vmem [shape: f32[1,128], index: 6, kind: input, shape index: {}]   ;;  %s889_s7 = inlined_call_operand.hbm [shape: bf16[128,128], index: 7, kind: input, shape index: {}]   ;;  %s890_s8 = inlined_call_operand.vmem [shape: f32[1,128], index: 8, kind: input, shape index: {}]   ;;  %s891_s9 = inlined_call_operand.vmem [shape: f32[16,4], index: 9, kind: output, shape index: {}]  }
   0x1   :  { %15 = vsyncpa [#allocation5], 0  ;;  %s713_s30 = smov [#allocation4]   ;;  %s714_s11 = smov [#allocation2]  }
   0x2   :  { %s41_s10 = sshll.u32 %s713_s30, 4  ;;  %s27_s12 = sshll.u32 %s714_s11, 4  ;;  %s42_s10 = int_to_ptr.vmem [resolvable:$true] %s41_s10  ;;  %s770_s12 = int_to_ptr.vmem [resolvable:$true] %s27_s12 }
   0x3   :  { %s643_s15 = scalar_lea.hbm %s887_s5, 1024 }
   0x4   :  { %p644_p0 = scmp.ne.s32.totalorder %s887_s5, %s643_s15  ;;  %p647_p1 = scmp.lt.u32.totalorder %s643_s15, %s887_s5 }
   0x6   :  { %p649_p2 = pnand %p647_p1, %p644_p0 }
   0x8   :  { %652 = shalt.err (!%p649_p2)
}
   0x9   :  { %s653_s20 = scalar_lea.vmem %s42_s10, 1024  ;;  %p658_p4 = scmp.lt.s32.totalorder %s42_s10, %s42_s10 }
   0xa   :  { %p654_p3 = scmp.ne.s32.totalorder %s42_s10, %s653_s20  ;;  %p659_p5 = scmp.lt.s32.totalorder %s653_s20, %s653_s20 }
   0xc   :  { %p660_p6 = por %p659_p5, %p658_p4 }
   0xe   :  { %p661_p7 = pnand %p660_p6, %p654_p3 }
  0x10   :  { %664 = shalt.err (!%p661_p7)
}
  0x11   :  { %s715_s21 = smov 64   ;;  %s716_s22 = smov 4  }
  0x12   :  { %47 = dma.hbm_to_vmem [thread:$0]  %s887_s5, 1024, %s42_s10, [#allocation5], %s715_s21, %s715_s21, %s716_s22  }
  0x13   :  { %s665_s27 = scalar_lea.hbm %s885_s3, 1024 }
  0x14   :  { %p666_p8 = scmp.ne.s32.totalorder %s885_s3, %s665_s27  ;;  %p669_p9 = scmp.lt.u32.totalorder %s665_s27, %s885_s3 }
  0x16   :  { %p671_p10 = pnand %p669_p9, %p666_p8 }
  0x18   :  { %674 = shalt.err (!%p671_p10)
}
  0x19   :  { %s675_s13 = scalar_lea.vmem %s770_s12, 1024  ;;  %p680_p12 = scmp.lt.s32.totalorder %s770_s12, %s770_s12 }
  0x1a   :  { %p676_p11 = scmp.ne.s32.totalorder %s770_s12, %s675_s13  ;;  %p681_p13 = scmp.lt.s32.totalorder %s675_s13, %s675_s13 }
  0x1c   :  { %p682_p0 = por %p681_p13, %p680_p12 }
  0x1e   :  { %p683_p1 = pnand %p682_p0, %p676_p11 }
  0x20   :  { %686 = shalt.err (!%p683_p1)
}
  0x21   :  { %33 = dma.hbm_to_vmem [thread:$0]  %s885_s3, 1024, %s770_s12, [#allocation3], %s715_s21, %s715_s21, %s716_s22  }
  0x22   :  { %s717_s14 = smov [#allocation6]   ;;  %s687_s18 = scalar_lea.hbm %s889_s7, 1024 }
  0x23   :  { %s55_s15 = sshll.u32 %s717_s14, 4  ;;  %p688_p2 = scmp.ne.s32.totalorder %s889_s7, %s687_s18  ;;  %s56_s15 = int_to_ptr.vmem [resolvable:$true] %s55_s15 }
  0x24   :  { %p691_p3 = scmp.lt.u32.totalorder %s687_s18, %s889_s7 }
  0x26   :  { %p693_p4 = pnand %p691_p3, %p688_p2 }
  0x28   :  { %696 = shalt.err (!%p693_p4)
}
  0x29   :  { %s697_s25 = scalar_lea.vmem %s56_s15, 1024  ;;  %p702_p6 = scmp.lt.s32.totalorder %s56_s15, %s56_s15 }
  0x2a   :  { %p698_p5 = scmp.ne.s32.totalorder %s56_s15, %s697_s25  ;;  %p703_p7 = scmp.lt.s32.totalorder %s697_s25, %s697_s25 }
  0x2c   :  { %p704_p8 = por %p703_p7, %p702_p6 }
  0x2e   :  { %p705_p9 = pnand %p704_p8, %p698_p5 }
  0x30   :  { %708 = shalt.err (!%p705_p9)
}
  0x31   :  { %61 = dma.hbm_to_vmem [thread:$0]  %s889_s7, 1024, %s56_s15, [#allocation5], %s715_s21, %s715_s21, %s716_s22  }
  0x32   :  { %709 = dma.done.wait [#allocation3], 1024  }
  0x33   :  { %710 = vsyncadd [#allocation3], 4294966272 }
  0x34   :  { %711 = dma.done.wait [#allocation5], 2048  }
  0x35   :  { %712 = vsyncadd [#allocation5], 4294965248  ;;  %v718_v0 = vmov 0.0   ;;  %vm719_vm0 = vmmov 0   ;;  %vm89_vm1 = vcmask 1043456   ;;  %v74_v2 = vld [vmem:[%s882_s0] sm:$0xff] }
  0x36   :  { %546 = vmatprep.subr.bf16.mxu0 %v718_v0  ;;  %548 = vmatprep.mubr.msk.bf16.mxu0 %vm719_vm0, %v718_v0  ;;  %v77_v1 = vld [vmem:[%s883_s1] sm:$0xf]  ;;  %v75_v3 = vld [vmem:[%s882_s0 + $0x8] sm:$0xff]  ;;  %vm85_vm2 = vcmask 64512   ;;  %v621_v8 = vld [vmem:[#allocation2 + $0x10] sm:$0xff]   ;;  %vm479_vm3 = vcmask 31744  }
  0x37   :  { %552 = vmatprep.subr.bf16.mxu1 %v718_v0  ;;  %568 = vmatprep.mubr.msk.bf16.mxu1 %vm719_vm0, %v718_v0  ;;  %v91_v4 = vsel %vm89_vm1, %v77_v1, 0  ;;  %v76_v5 = vpack.c.bf16 %v75_v3, %v74_v2  ;;  %v619_v6 = vld [vmem:[#allocation2] sm:$0xff]   ;;  %v620_v7 = vld [vmem:[#allocation2 + $0x8] sm:$0xff]   ;;  %v622_v9 = vld [vmem:[#allocation2 + $0x18] sm:$0xff]  }
  0x38   :  { %547 = vmatpush3.bf16.msra.mxu0 %v91_v4  ;;  %553 = vmatpush3.bf16.msra.mxu1 %v619_v6  ;;  %v623_v10 = vld [vmem:[#allocation2 + $0x20] sm:$0xff]   ;;  %v624_v11 = vld [vmem:[#allocation2 + $0x28] sm:$0xff]   ;;  %v625_v12 = vld [vmem:[#allocation2 + $0x30] sm:$0xff]  }
  0x39   :  { %572 = vmatprep.subr.bf16.mxu0 %v718_v0  ;;  %554 = vmatprep.subr.bf16.mxu1 %v718_v0  ;;  %v626_v13 = vld [vmem:[#allocation2 + $0x38] sm:$0xff]   ;;  %v627_v14 = vld [vmem:[#allocation4] sm:$0xff]   ;;  %v628_v15 = vld [vmem:[#allocation4 + $0x8] sm:$0xff]  }
  0x3a   :  { %v629_v16 = vld [vmem:[#allocation4 + $0x10] sm:$0xff]   ;;  %v630_v17 = vld [vmem:[#allocation4 + $0x18] sm:$0xff]   ;;  %v631_v18 = vld [vmem:[#allocation4 + $0x20] sm:$0xff]  }
  0x3b   :  { %549 = vmatmul.mubr.msk.bf16.vlgmr.msra.gmra.mrb[0].mxu0 %vm85_vm2, %v76_v5  ;;  %v632_v19 = vld [vmem:[#allocation4 + $0x28] sm:$0xff]   ;;  %v488_v20 = vld [vmem:[%s884_s2] ss:$0 sm:$0xff]  ;;  %v633_v30 = vld [vmem:[#allocation4 + $0x30] sm:$0xff]  }
  0x3c   :  { %588 = vmatprep.mubr.msk.bf16.mxu0 %vm719_vm0, %v718_v0  ;;  %555 = vmatpush3.bf16.msra.mxu1 %v620_v7  ;;  %v634_v31 = vld [vmem:[#allocation4 + $0x38] sm:$0xff]   ;;  %v635_v32 = vld [vmem:[#allocation6] sm:$0xff]   ;;  %v636_v33 = vld [vmem:[#allocation6 + $0x8] sm:$0xff]  }
  0x3d   :  { %556 = vmatprep.subr.bf16.mxu1 %v718_v0  ;;  %573 = vmatpush3.bf16.msra.mxu0 %v627_v14  ;;  %v637_v34 = vld [vmem:[#allocation6 + $0x10] sm:$0xff]   ;;  %v638_v35 = vld [vmem:[#allocation6 + $0x18] sm:$0xff]   ;;  %v639_v36 = vld [vmem:[#allocation6 + $0x20] sm:$0xff]  }
  0x3e   :  { %574 = vmatprep.subr.bf16.mxu0 %v718_v0  ;;  %v640_v37 = vld [vmem:[#allocation6 + $0x28] sm:$0xff]   ;;  %v490_v38 = vld [vmem:[%s886_s4] ss:$0 sm:$0xff]  ;;  %v641_v48 = vld [vmem:[#allocation6 + $0x30] sm:$0xff]  }
  0x3f   :  { %v642_v49 = vld [vmem:[#allocation6 + $0x38] sm:$0xff]   ;;  %v499_v50 = vld [vmem:[%s888_s6] ss:$0 sm:$0xff] }
  0x40   :  { %557 = vmatpush3.bf16.msra.mxu1 %v621_v8  ;;  %v508_v60 = vld [vmem:[%s890_s8] ss:$0 sm:$0xff] }
  0x41   :  { %558 = vmatprep.subr.bf16.mxu1 %v718_v0  ;;  %575 = vmatpush3.bf16.msra.mxu0 %v628_v15 }
  0x42   :  { %576 = vmatprep.subr.bf16.mxu0 %v718_v0 }
  0x44   :  { %559 = vmatpush3.bf16.msra.mxu1 %v622_v9 }
  0x45   :  { %560 = vmatprep.subr.bf16.mxu1 %v718_v0  ;;  %577 = vmatpush3.bf16.msra.mxu0 %v629_v16 }
  0x46   :  { %578 = vmatprep.subr.bf16.mxu0 %v718_v0 }
  0x48   :  { %561 = vmatpush3.bf16.msra.mxu1 %v623_v10 }
  0x49   :  { %562 = vmatprep.subr.bf16.mxu1 %v718_v0  ;;  %579 = vmatpush3.bf16.msra.mxu0 %v630_v17 }
  0x4a   :  { %580 = vmatprep.subr.bf16.mxu0 %v718_v0 }
  0x4c   :  { %563 = vmatpush3.bf16.msra.mxu1 %v624_v11 }
  0x4d   :  { %564 = vmatprep.subr.bf16.mxu1 %v718_v0  ;;  %581 = vmatpush3.bf16.msra.mxu0 %v631_v18 }
  0x4e   :  { %582 = vmatprep.subr.bf16.mxu0 %v718_v0 }
  0x50   :  { %565 = vmatpush3.bf16.msra.mxu1 %v625_v12 }
  0x51   :  { %566 = vmatprep.subr.bf16.mxu1 %v718_v0  ;;  %583 = vmatpush3.bf16.msra.mxu0 %v632_v19 }
  0x52   :  { %584 = vmatprep.subr.bf16.mxu0 %v718_v0 }
  0x54   :  { %567 = vmatpush3.bf16.msra.mxu1 %v626_v13 }
  0x55   :  { %592 = vmatprep.subr.bf16.mxu1 %v718_v0  ;;  %585 = vmatpush3.bf16.msra.mxu0 %v633_v30 }
  0x56   :  { %586 = vmatprep.subr.bf16.mxu0 %v718_v0 }
  0x59   :  { %587 = vmatpush3.bf16.msra.mxu0 %v634_v31 }
 0x10e   :  { %v127_v21 = vpop.f32.mrb[0].mxu0 }
 0x10f   :  { %v128_v22 = vadd.f32 %v488_v20, %v127_v21  ;;  %v550_v23 = vpop.f32.mrb[1].mxu0 }
 0x110   :  { %v130_v24 = vpop.f32.mrb[2].mxu0 }
 0x111   :  { %v131_v25 = vadd.f32 %v488_v20, %v130_v24  ;;  %v551_v26 = vpop.f32.mrb[3].mxu0  ;;  %v134_v27 = vmax.f32 %v128_v22, 0.0 }
 0x113   :  { %v135_v28 = vmax.f32 %v131_v25, 0.0 }
 0x115   :  { %v136_v29 = vpack.c.bf16 %v135_v28, %v134_v27 }
 0x117   :  { %569 = vmatmul.mubr.bf16.vlgmr.msra.gmra.mrb[0].mxu1 %v136_v29 }
 0x118   :  { %608 = vmatprep.mubr.msk.bf16.mxu1 %vm719_vm0, %v718_v0  ;;  %593 = vmatpush3.bf16.msra.mxu1 %v635_v32 }
 0x119   :  { %594 = vmatprep.subr.bf16.mxu1 %v718_v0 }
 0x11c   :  { %595 = vmatpush3.bf16.msra.mxu1 %v636_v33 }
 0x11d   :  { %596 = vmatprep.subr.bf16.mxu1 %v718_v0 }
 0x120   :  { %597 = vmatpush3.bf16.msra.mxu1 %v637_v34 }
 0x121   :  { %598 = vmatprep.subr.bf16.mxu1 %v718_v0 }
 0x124   :  { %599 = vmatpush3.bf16.msra.mxu1 %v638_v35 }
 0x125   :  { %600 = vmatprep.subr.bf16.mxu1 %v718_v0 }
 0x128   :  { %601 = vmatpush3.bf16.msra.mxu1 %v639_v36 }
 0x129   :  { %602 = vmatprep.subr.bf16.mxu1 %v718_v0 }
 0x12c   :  { %603 = vmatpush3.bf16.msra.mxu1 %v640_v37 }
 0x12d   :  { %604 = vmatprep.subr.bf16.mxu1 %v718_v0 }
 0x130   :  { %605 = vmatpush3.bf16.msra.mxu1 %v641_v48 }
 0x131   :  { %606 = vmatprep.subr.bf16.mxu1 %v718_v0 }
 0x134   :  { %607 = vmatpush3.bf16.msra.mxu1 %v642_v49 }
 0x1ea   :  { %v242_v39 = vpop.f32.mrb[0].mxu1 }
 0x1eb   :  { %v243_v40 = vadd.f32 %v490_v38, %v242_v39  ;;  %v570_v41 = vpop.f32.mrb[1].mxu1 }
 0x1ec   :  { %v245_v42 = vpop.f32.mrb[2].mxu1 }
 0x1ed   :  { %v246_v43 = vadd.f32 %v490_v38, %v245_v42  ;;  %v571_v44 = vpop.f32.mrb[3].mxu1  ;;  %v249_v45 = vmax.f32 %v243_v40, 0.0 }
 0x1ef   :  { %v250_v46 = vmax.f32 %v246_v43, 0.0 }
 0x1f1   :  { %v251_v47 = vpack.c.bf16 %v250_v46, %v249_v45 }
 0x1f3   :  { %589 = vmatmul.mubr.bf16.vlgmr.msra.gmra.mrb[4].mxu0 %v251_v47 }
 0x2c6   :  { %v357_v51 = vpop.f32.mrb[4].mxu0 }
 0x2c7   :  { %v358_v52 = vadd.f32 %v499_v50, %v357_v51  ;;  %v590_v53 = vpop.f32.mrb[5].mxu0 }
 0x2c8   :  { %v360_v54 = vpop.f32.mrb[6].mxu0 }
 0x2c9   :  { %v361_v55 = vadd.f32 %v499_v50, %v360_v54  ;;  %v591_v56 = vpop.f32.mrb[7].mxu0  ;;  %v364_v57 = vmax.f32 %v358_v52, 0.0 }
 0x2cb   :  { %v365_v58 = vmax.f32 %v361_v55, 0.0 }
 0x2cd   :  { %v366_v59 = vpack.c.bf16 %v365_v58, %v364_v57 }
 0x2cf   :  { %609 = vmatmul.mubr.bf16.vlgmr.msra.gmra.mrb[4].mxu1 %v366_v59 }
 0x3a2   :  { %v472_v61 = vpop.f32.mrb[4].mxu1 }
 0x3a3   :  { %v473_v62 = vadd.f32 %v508_v60, %v472_v61  ;;  %v610_v63 = vpop.f32.mrb[5].mxu1 }
 0x3a4   :  { %v475_v0 = vpop.f32.mrb[6].mxu1 }
 0x3a5   :  { %480 = vst.msk [vmem:[%s891_s9] sm:$0xff] %vm479_vm3, %v473_v62  ;;  %v476_v1 = vadd.f32 %v508_v60, %v475_v0  ;;  %v611_v2 = vpop.f32.mrb[7].mxu1 }
 0x3a7   :  { %481 = vst.msk [vmem:[%s891_s9 + $0x8] sm:$0xff] %vm479_vm3, %v476_v1 }
 0x3a8   :  { %486 = vsyncpa [#allocation3], 1 }
 0x3a9   :  { %487 = vsyncpa [#allocation5], 1 }

</bundles_post_ra>
